<compile_context>
chip_gen: v5e
topology: v5e:2x2
jax: 0.10.0
libtpu: 0.0.40
codegen_flags: <defaults>
</compile_context>

<pallas_src>
import jax
import jax.numpy as jnp
from jax.experimental import pallas as pl
from jax.experimental.pallas import tpu as pltpu

EPS = 1e-5  # PyTorch BatchNorm1d default eps


# ---------------------------------------------------------------------------
# Fused Pallas kernel: (GAP+base linear) matmuls -> ReLU -> head -> BN2 -> out
# ---------------------------------------------------------------------------
def _fcn2_fused_kernel(x1_ref, x2_ref,
                       wg1_ref, wg2_ref, bb_ref,
                       wh_ref, bh_ref,
                       s2_ref, t2_ref,
                       wo_ref, bo_ref,
                       out_ref, feat_ref):
    # GAP is pre-folded into wg1/wg2 (repeat(W.T/HW)), so base1/base2 are just
    # two K=C*HW MXU matmuls whose results land in disjoint lane ranges of one
    # (tm, inf1+inf2) tile (zero-padded weight slabs).
    f = (jnp.dot(x1_ref[...], wg1_ref[...], preferred_element_type=jnp.float32)
         + jnp.dot(x2_ref[...], wg2_ref[...], preferred_element_type=jnp.float32)
         + bb_ref[...])
    f = jnp.maximum(f, 0.0)                                   # base ReLU

    # Head linear on the "concat" (bn11/bn12 pre-folded into wh/bh), then ReLU.
    h = jnp.dot(f, wh_ref[...], preferred_element_type=jnp.float32) + bh_ref[...]
    h = jnp.maximum(h, 0.0)

    # BatchNorm1d(512) as precomputed scale/shift; Dropout(0.75) = identity (eval).
    h = h * s2_ref[...] + t2_ref[...]
    feat_ref[...] = h

    # Linear(512 -> 1) as a lane reduction (avoids a 1-lane MXU matmul).
    out_ref[...] = jnp.sum(h * wo_ref[...], axis=-1, keepdims=True) + bo_ref[...]


# ---------------------------------------------------------------------------
# One-time parameter folding (BN -> linear weights, GAP -> weights, transpose)
# ---------------------------------------------------------------------------
def fold_params(p, hw):
    inf1 = p["base1_w"].shape[0]
    inf2 = p["base2_w"].shape[0]
    c = p["base1_w"].shape[1]
    ftot = inf1 + inf2

    # BN11 / BN12 (inference) folded into the head linear.
    s1 = p["bn11_g"] * jax.lax.rsqrt(p["bn11_v"] + EPS)
    s2 = p["bn12_g"] * jax.lax.rsqrt(p["bn12_v"] + EPS)
    scale_cat = jnp.concatenate([s1, s2])                              # (ftot,)
    shift_cat = jnp.concatenate([p["bn11_b"] - p["bn11_m"] * s1,
                                 p["bn12_b"] - p["bn12_m"] * s2])      # (ftot,)
    wlT = p["l_w"].T                                                   # (ftot, 512)
    wh = scale_cat[:, None] * wlT
    bh = p["l_b"] + shift_cat @ wlT

    # Base weights: pre-transposed, zero-padded side-by-side, then GAP folded
    # in by repeating each channel row HW times with a 1/HW scale.
    wb1 = jnp.zeros((c, ftot), jnp.float32).at[:, :inf1].set(p["base1_w"].T)
    wb2 = jnp.zeros((c, ftot), jnp.float32).at[:, inf1:].set(p["base2_w"].T)
    wg1 = jnp.repeat(wb1 / hw, hw, axis=0)                             # (C*HW, ftot)
    wg2 = jnp.repeat(wb2 / hw, hw, axis=0)                             # (C*HW, ftot)
    bb = jnp.concatenate([p["base1_b"], p["base2_b"]])

    # BN2 as scale/shift (feature output must be post-BN2, so keep explicit).
    s2b = p["bn2_g"] * jax.lax.rsqrt(p["bn2_v"] + EPS)
    t2b = p["bn2_b"] - p["bn2_m"] * s2b

    row = lambda v: v.reshape(1, -1)
    return dict(
        wg1=wg1, wg2=wg2, bb=row(bb),
        wh=wh, bh=row(bh),
        s2=row(s2b), t2=row(t2b),
        wo=row(p["o_w"][0]),                 # out_f == 1
        bo=p["o_b"].reshape(1, 1),
    )


# ---------------------------------------------------------------------------
# Batch-tile selection
# ---------------------------------------------------------------------------
def _pick_tm(n, tm_max=1024):
    # Tiny batches: one block covering the whole batch (block dim == array dim).
    if n <= 16:
        return n
    # Otherwise aim for >= 2 grid steps (v7x has 2 TensorCores; the "parallel"
    # grid axis is what shards across them) while capping the tile so the
    # double-buffered f32 working set stays well under v7x's 64 MiB VMEM.
    half = pl.cdiv(n, 2)
    return min(tm_max, ((half + 7) // 8) * 8)


# ---------------------------------------------------------------------------
# Forward wrapper (single pallas_call, batch-tiled grid)
# ---------------------------------------------------------------------------
def fcn2_forward(fp, x1, x2, *, tm_max=1024):
    n, c, h, w = x1.shape
    chw = c * h * w
    x1f = x1.reshape(n, chw)                 # dense (8,128)-aligned slabs
    x2f = x2.reshape(n, chw)

    ftot = fp["wh"].shape[0]                 # inf1 + inf2
    hid = fp["wh"].shape[1]                  # 512
    tm = _pick_tm(n, tm_max)
    grid = (pl.cdiv(n, tm),)

    const2 = lambda i: (0, 0)                # weights: VMEM-resident across steps

    out, feat = pl.pallas_call(
        _fcn2_fused_kernel,
        out_shape=(jax.ShapeDtypeStruct((n, 1), jnp.float32),
                   jax.ShapeDtypeStruct((n, hid), jnp.float32)),
        grid_spec=pltpu.PrefetchScalarGridSpec(
            num_scalar_prefetch=0,
            grid=grid,
            in_specs=[
                pl.BlockSpec((tm, chw), lambda i: (i, 0)),        # x1 (flat)
                pl.BlockSpec((tm, chw), lambda i: (i, 0)),        # x2 (flat)
                pl.BlockSpec((chw, ftot), const2),                # wg1 (GAP-folded)
                pl.BlockSpec((chw, ftot), const2),                # wg2 (GAP-folded)
                pl.BlockSpec((1, ftot), const2),                  # bb
                pl.BlockSpec((ftot, hid), const2),                # wh (BN-folded)
                pl.BlockSpec((1, hid), const2),                   # bh
                pl.BlockSpec((1, hid), const2),                   # bn2 scale
                pl.BlockSpec((1, hid), const2),                   # bn2 shift
                pl.BlockSpec((1, hid), const2),                   # wo row
                pl.BlockSpec((1, 1), const2),                     # bo
            ],
            out_specs=[
                pl.BlockSpec((tm, 1), lambda i: (i, 0)),
                pl.BlockSpec((tm, hid), lambda i: (i, 0)),
            ],
        ),
        compiler_params=pltpu.CompilerParams(
            dimension_semantics=("parallel",),
            vmem_limit_bytes=48 << 20),      # fits tm=1024 f32; < v7x 64 MiB VMEM
    )(x1f, x2f, fp["wg1"], fp["wg2"], fp["bb"], fp["wh"], fp["bh"],
      fp["s2"], fp["t2"], fp["wo"], fp["bo"])
    return out, feat


# ---------------------------------------------------------------------------
# Deterministic parameter initialization (PyTorch layouts)
# ---------------------------------------------------------------------------
def init_params(key, c_in, inf1, inf2, hidden=512, out_f=1):
    ks = jax.random.split(key, 8)

    def bn(kk, f):
        k1, k2, k3, k4 = jax.random.split(kk, 4)
        return dict(
            g=1.0 + 0.1 * jax.random.normal(k1, (f,), jnp.float32),
            b=0.1 * jax.random.normal(k2, (f,), jnp.float32),
            m=0.1 * jax.random.normal(k3, (f,), jnp.float32),
            v=1.0 + 0.1 * jnp.abs(jax.random.normal(k4, (f,), jnp.float32)),
        )

    bn11, bn12, bn2 = bn(ks[0], inf1), bn(ks[1], inf2), bn(ks[2], hidden)
    p = {
        "base1_w": 0.1 * jax.random.normal(ks[3], (inf1, c_in), jnp.float32),
        "base1_b": jnp.zeros((inf1,), jnp.float32),
        "base2_w": 0.1 * jax.random.normal(ks[4], (inf2, c_in), jnp.float32),
        "base2_b": jnp.zeros((inf2,), jnp.float32),
        "l_w": 0.05 * jax.random.normal(ks[5], (hidden, inf1 + inf2), jnp.float32),
        "l_b": 0.01 * jax.random.normal(ks[6], (hidden,), jnp.float32),
        "o_w": 0.05 * jax.random.normal(ks[7], (out_f, hidden), jnp.float32),
        "o_b": jnp.zeros((out_f,), jnp.float32),
    }
    for name, d in (("bn11", bn11), ("bn12", bn12), ("bn2", bn2)):
        for kk, vv in d.items():
            p[f"{name}_{kk}"] = vv
    return p


# ---------------------------------------------------------------------------
# Pure-JAX reference (unfused, for correctness check)
# ---------------------------------------------------------------------------
def reference(p, x1, x2):
    def bnorm(x, g, b, m, v):
        return (x - m) * g / jnp.sqrt(v + EPS) + b

    f1 = jnp.maximum(jnp.mean(x1, axis=(2, 3)) @ p["base1_w"].T + p["base1_b"], 0.0)
    f2 = jnp.maximum(jnp.mean(x2, axis=(2, 3)) @ p["base2_w"].T + p["base2_b"], 0.0)
    f1 = bnorm(f1, p["bn11_g"], p["bn11_b"], p["bn11_m"], p["bn11_v"])
    f2 = bnorm(f2, p["bn12_g"], p["bn12_b"], p["bn12_m"], p["bn12_v"])
    h = jnp.concatenate([f1, f2], axis=1) @ p["l_w"].T + p["l_b"]
    h = jnp.maximum(h, 0.0)
    h = bnorm(h, p["bn2_g"], p["bn2_b"], p["bn2_m"], p["bn2_v"])
    out = h @ p["o_w"].T + p["o_b"]
    return out, h


# ---------------------------------------------------------------------------
if __name__ == "__main__":
    key = jax.random.PRNGKey(0)
    N, C, H, W = 2, 4, 16, 16
    INF1, INF2 = 32, 32

    kx1, kx2, kp = jax.random.split(key, 3)
    x1 = jax.random.normal(kx1, (N, C, H, W), jnp.float32)
    x2 = jax.random.normal(kx2, (N, C, H, W), jnp.float32)
    params = init_params(kp, C, INF1, INF2)

    fused_params = fold_params(params, H * W)   # one-time parameter prep
    out, feat = fcn2_forward(fused_params, x1, x2)
    jax.block_until_ready((out, feat))

    ref_out, ref_feat = reference(params, x1, x2)
    assert out.shape == (N, 1) and feat.shape == (N, 512)
    assert jnp.allclose(out, ref_out, rtol=1e-4, atol=1e-4)
    assert jnp.allclose(feat, ref_feat, rtol=1e-4, atol=1e-4)

    print("KERNEL_OK")
</pallas_src>

<mosaic_0001>
module attributes {stable_mosaic.version = 11 : i64} {
  func.func @_fcn2_fused_kernel(%arg0: i32, %arg1: memref<2x1024xf32, #tpu.memory_space<vmem>>, %arg2: memref<2x1024xf32, #tpu.memory_space<vmem>>, %arg3: memref<1024x64xf32, #tpu.memory_space<vmem>>, %arg4: memref<1024x64xf32, #tpu.memory_space<vmem>>, %arg5: memref<1x64xf32, #tpu.memory_space<vmem>>, %arg6: memref<64x512xf32, #tpu.memory_space<vmem>>, %arg7: memref<1x512xf32, #tpu.memory_space<vmem>>, %arg8: memref<1x512xf32, #tpu.memory_space<vmem>>, %arg9: memref<1x512xf32, #tpu.memory_space<vmem>>, %arg10: memref<1x512xf32, #tpu.memory_space<vmem>>, %arg11: memref<1x1xf32, #tpu.memory_space<vmem>>, %arg12: memref<2x1xf32, #tpu.memory_space<vmem>>, %arg13: memref<2x512xf32, #tpu.memory_space<vmem>>) attributes {dimension_semantics = [#tpu.dimension_semantics<parallel>], iteration_bounds = array<i64: 1>, scalar_prefetch = 0 : i64, scratch_operands = 0 : i64, tpu.core_type = #tpu.core_type<tc>, window_params = [{transform_indices = @transform_0, window_bounds = array<i64: 2, 1024>}, {transform_indices = @transform_1, window_bounds = array<i64: 2, 1024>}, {pipeline_mode = #tpu.pipeline_mode<synchronous>, transform_indices = @transform_2, window_bounds = array<i64: 1024, 64>}, {pipeline_mode = #tpu.pipeline_mode<synchronous>, transform_indices = @transform_3, window_bounds = array<i64: 1024, 64>}, {pipeline_mode = #tpu.pipeline_mode<synchronous>, transform_indices = @transform_4, window_bounds = array<i64: 1, 64>}, {pipeline_mode = #tpu.pipeline_mode<synchronous>, transform_indices = @transform_5, window_bounds = array<i64: 64, 512>}, {pipeline_mode = #tpu.pipeline_mode<synchronous>, transform_indices = @transform_6, window_bounds = array<i64: 1, 512>}, {pipeline_mode = #tpu.pipeline_mode<synchronous>, transform_indices = @transform_7, window_bounds = array<i64: 1, 512>}, {pipeline_mode = #tpu.pipeline_mode<synchronous>, transform_indices = @transform_8, window_bounds = array<i64: 1, 512>}, {pipeline_mode = #tpu.pipeline_mode<synchronous>, transform_indices = @transform_9, window_bounds = array<i64: 1, 512>}, {pipeline_mode = #tpu.pipeline_mode<synchronous>, transform_indices = @transform_10, window_bounds = array<i64: 1, 1>}, {transform_indices = @transform_11, window_bounds = array<i64: 2, 1>}, {transform_indices = @transform_12, window_bounds = array<i64: 2, 512>}]} {
    %c0 = arith.constant 0 : index
    %c0_0 = arith.constant 0 : index
    %0 = vector.load %arg1[%c0, %c0_0] : memref<2x1024xf32, #tpu.memory_space<vmem>>, vector<2x1024xf32>
    %c0_1 = arith.constant 0 : index
    %c0_2 = arith.constant 0 : index
    %1 = vector.load %arg3[%c0_1, %c0_2] : memref<1024x64xf32, #tpu.memory_space<vmem>>, vector<1024x64xf32>
    %cst = arith.constant dense<0.000000e+00> : vector<2x64xf32>
    %2 = tpu.matmul %0, %1, %cst {dimension_numbers = #tpu.dot_dimension_numbers<[1], [0], [0], [1], [0, 0, 1, 1], [], []>} : vector<2x1024xf32>, vector<1024x64xf32>, vector<2x64xf32> -> vector<2x64xf32>
    %c0_3 = arith.constant 0 : index
    %c0_4 = arith.constant 0 : index
    %3 = vector.load %arg2[%c0_3, %c0_4] : memref<2x1024xf32, #tpu.memory_space<vmem>>, vector<2x1024xf32>
    %c0_5 = arith.constant 0 : index
    %c0_6 = arith.constant 0 : index
    %4 = vector.load %arg4[%c0_5, %c0_6] : memref<1024x64xf32, #tpu.memory_space<vmem>>, vector<1024x64xf32>
    %cst_7 = arith.constant dense<0.000000e+00> : vector<2x64xf32>
    %5 = tpu.matmul %3, %4, %cst_7 {dimension_numbers = #tpu.dot_dimension_numbers<[1], [0], [0], [1], [0, 0, 1, 1], [], []>} : vector<2x1024xf32>, vector<1024x64xf32>, vector<2x64xf32> -> vector<2x64xf32>
    %6 = arith.addf %2, %5 : vector<2x64xf32>
    %c0_8 = arith.constant 0 : index
    %c0_9 = arith.constant 0 : index
    %7 = vector.load %arg5[%c0_8, %c0_9] : memref<1x64xf32, #tpu.memory_space<vmem>>, vector<1x64xf32>
    %8 = vector.broadcast %7 : vector<1x64xf32> to vector<2x64xf32>
    %9 = arith.addf %6, %8 : vector<2x64xf32>
    %cst_10 = arith.constant 0.000000e+00 : f32
    %10 = vector.broadcast %cst_10 : f32 to vector<2x64xf32>
    %11 = arith.maximumf %9, %10 : vector<2x64xf32>
    %c0_11 = arith.constant 0 : index
    %c0_12 = arith.constant 0 : index
    %12 = vector.load %arg6[%c0_11, %c0_12] : memref<64x512xf32, #tpu.memory_space<vmem>>, vector<64x512xf32>
    %cst_13 = arith.constant dense<0.000000e+00> : vector<2x512xf32>
    %13 = tpu.matmul %11, %12, %cst_13 {dimension_numbers = #tpu.dot_dimension_numbers<[1], [0], [0], [1], [0, 0, 1, 1], [], []>} : vector<2x64xf32>, vector<64x512xf32>, vector<2x512xf32> -> vector<2x512xf32>
    %c0_14 = arith.constant 0 : index
    %c0_15 = arith.constant 0 : index
    %14 = vector.load %arg7[%c0_14, %c0_15] : memref<1x512xf32, #tpu.memory_space<vmem>>, vector<1x512xf32>
    %15 = vector.broadcast %14 : vector<1x512xf32> to vector<2x512xf32>
    %16 = arith.addf %13, %15 : vector<2x512xf32>
    %cst_16 = arith.constant 0.000000e+00 : f32
    %17 = vector.broadcast %cst_16 : f32 to vector<2x512xf32>
    %18 = arith.maximumf %16, %17 : vector<2x512xf32>
    %c0_17 = arith.constant 0 : index
    %c0_18 = arith.constant 0 : index
    %19 = vector.load %arg8[%c0_17, %c0_18] : memref<1x512xf32, #tpu.memory_space<vmem>>, vector<1x512xf32>
    %20 = vector.broadcast %19 : vector<1x512xf32> to vector<2x512xf32>
    %21 = arith.mulf %18, %20 : vector<2x512xf32>
    %c0_19 = arith.constant 0 : index
    %c0_20 = arith.constant 0 : index
    %22 = vector.load %arg9[%c0_19, %c0_20] : memref<1x512xf32, #tpu.memory_space<vmem>>, vector<1x512xf32>
    %23 = vector.broadcast %22 : vector<1x512xf32> to vector<2x512xf32>
    %24 = arith.addf %21, %23 : vector<2x512xf32>
    %c0_21 = arith.constant 0 : index
    %c0_22 = arith.constant 0 : index
    %25 = vector.load %arg13[%c0_21, %c0_22] : memref<2x512xf32, #tpu.memory_space<vmem>>, vector<2x512xf32>
    tpu.vector_store %arg13[%c0_21, %c0_22], %24 {strides = array<i32>} : memref<2x512xf32, #tpu.memory_space<vmem>>, vector<2x512xf32>,
    %c0_23 = arith.constant 0 : index
    %c0_24 = arith.constant 0 : index
    %26 = vector.load %arg10[%c0_23, %c0_24] : memref<1x512xf32, #tpu.memory_space<vmem>>, vector<1x512xf32>
    %27 = vector.broadcast %26 : vector<1x512xf32> to vector<2x512xf32>
    %28 = arith.mulf %24, %27 : vector<2x512xf32>
    %cst_25 = arith.constant dense<0.000000e+00> : vector<2xf32>
    %29 = vector.multi_reduction <add>, %28, %cst_25 [1] : vector<2x512xf32> to vector<2xf32>
    %30 = vector.shape_cast %29 : vector<2xf32> to vector<2x1xf32>
    %c0_26 = arith.constant 0 : index
    %c0_27 = arith.constant 0 : index
    %31 = vector.load %arg11[%c0_26, %c0_27] : memref<1x1xf32, #tpu.memory_space<vmem>>, vector<1x1xf32>
    %32 = vector.broadcast %31 : vector<1x1xf32> to vector<2x1xf32>
    %33 = arith.addf %30, %32 : vector<2x1xf32>
    %c0_28 = arith.constant 0 : index
    %c0_29 = arith.constant 0 : index
    %34 = vector.load %arg12[%c0_28, %c0_29] : memref<2x1xf32, #tpu.memory_space<vmem>>, vector<2x1xf32>
    tpu.vector_store %arg12[%c0_28, %c0_29], %33 {strides = array<i32>} : memref<2x1xf32, #tpu.memory_space<vmem>>, vector<2x1xf32>,
    return
  }
  func.func @transform_0(%arg0: i32) -> (i32, i32) {
    %c0_i32 = arith.constant 0 : i32
    %c0_i32_0 = arith.constant 0 : i32
    return %arg0, %c0_i32 : i32, i32
  }
  func.func @transform_1(%arg0: i32) -> (i32, i32) {
    %c0_i32 = arith.constant 0 : i32
    %c0_i32_0 = arith.constant 0 : i32
    return %arg0, %c0_i32 : i32, i32
  }
  func.func @transform_2(%arg0: i32) -> (i32, i32) {
    %c0_i32 = arith.constant 0 : i32
    %c0_i32_0 = arith.constant 0 : i32
    %c0_i32_1 = arith.constant 0 : i32
    return %c0_i32, %c0_i32_0 : i32, i32
  }
  func.func @transform_3(%arg0: i32) -> (i32, i32) {
    %c0_i32 = arith.constant 0 : i32
    %c0_i32_0 = arith.constant 0 : i32
    %c0_i32_1 = arith.constant 0 : i32
    return %c0_i32, %c0_i32_0 : i32, i32
  }
  func.func @transform_4(%arg0: i32) -> (i32, i32) {
    %c0_i32 = arith.constant 0 : i32
    %c0_i32_0 = arith.constant 0 : i32
    %c0_i32_1 = arith.constant 0 : i32
    return %c0_i32, %c0_i32_0 : i32, i32
  }
  func.func @transform_5(%arg0: i32) -> (i32, i32) {
    %c0_i32 = arith.constant 0 : i32
    %c0_i32_0 = arith.constant 0 : i32
    %c0_i32_1 = arith.constant 0 : i32
    return %c0_i32, %c0_i32_0 : i32, i32
  }
  func.func @transform_6(%arg0: i32) -> (i32, i32) {
    %c0_i32 = arith.constant 0 : i32
    %c0_i32_0 = arith.constant 0 : i32
    %c0_i32_1 = arith.constant 0 : i32
    return %c0_i32, %c0_i32_0 : i32, i32
  }
  func.func @transform_7(%arg0: i32) -> (i32, i32) {
    %c0_i32 = arith.constant 0 : i32
    %c0_i32_0 = arith.constant 0 : i32
    %c0_i32_1 = arith.constant 0 : i32
    return %c0_i32, %c0_i32_0 : i32, i32
  }
  func.func @transform_8(%arg0: i32) -> (i32, i32) {
    %c0_i32 = arith.constant 0 : i32
    %c0_i32_0 = arith.constant 0 : i32
    %c0_i32_1 = arith.constant 0 : i32
    return %c0_i32, %c0_i32_0 : i32, i32
  }
  func.func @transform_9(%arg0: i32) -> (i32, i32) {
    %c0_i32 = arith.constant 0 : i32
    %c0_i32_0 = arith.constant 0 : i32
    %c0_i32_1 = arith.constant 0 : i32
    return %c0_i32, %c0_i32_0 : i32, i32
  }
  func.func @transform_10(%arg0: i32) -> (i32, i32) {
    %c0_i32 = arith.constant 0 : i32
    %c0_i32_0 = arith.constant 0 : i32
    %c0_i32_1 = arith.constant 0 : i32
    return %c0_i32, %c0_i32_0 : i32, i32
  }
  func.func @transform_11(%arg0: i32) -> (i32, i32) {
    %c0_i32 = arith.constant 0 : i32
    %c0_i32_0 = arith.constant 0 : i32
    return %arg0, %c0_i32 : i32, i32
  }
  func.func @transform_12(%arg0: i32) -> (i32, i32) {
    %c0_i32 = arith.constant 0 : i32
    %c0_i32_0 = arith.constant 0 : i32
    return %arg0, %c0_i32 : i32, i32
  }
}

</mosaic_0001>

<bundles_post_ra>
// kernel: tpu_custom_call.1
= control target key start
LH: loop header
LB: loop body
LE: loop exit
PB: predicated region body
PF: predicated region fallthrough
CT: control target
= control target key end

     0   :  { %s1919_s0 = inlined_call_operand.vmem [shape: f32[2,1024], index: 0, kind: input, shape index: {}]   ;;  %s1920_s1 = inlined_call_operand.vmem [shape: f32[2,1024], index: 1, kind: input, shape index: {}]   ;;  %s1921_s2 = inlined_call_operand.vmem [shape: f32[1024,64], index: 2, kind: input, shape index: {}]   ;;  %s1922_s3 = inlined_call_operand.vmem [shape: f32[1024,64], index: 3, kind: input, shape index: {}]   ;;  %s1923_s4 = inlined_call_operand.vmem [shape: f32[1,64], index: 4, kind: input, shape index: {}]   ;;  %s1924_s5 = inlined_call_operand.vmem [shape: f32[64,512], index: 5, kind: input, shape index: {}]   ;;  %s1925_s6 = inlined_call_operand.vmem [shape: f32[1,512], index: 6, kind: input, shape index: {}]   ;;  %s1926_s7 = inlined_call_operand.vmem [shape: f32[1,512], index: 7, kind: input, shape index: {}]   ;;  %s1927_s8 = inlined_call_operand.vmem [shape: f32[1,512], index: 8, kind: input, shape index: {}]   ;;  %s1928_s9 = inlined_call_operand.vmem [shape: f32[1,512], index: 9, kind: input, shape index: {}]   ;;  %s1929_s10 = inlined_call_operand.<no memory space> [shape: f32[1,1], index: 10, kind: input, shape index: {}]   ;;  %s1930_s11 = inlined_call_operand.vmem [shape: f32[2,1], index: 11, kind: output, shape index: {0}]   ;;  %s1931_s12 = inlined_call_operand.hbm [shape: f32[2,512], index: 12, kind: output, shape index: {1}]  }
   0x1   :  { %v18_v0 = vstv %s1929_s10 }
   0x2   :  { %19 = vst [vmem:[#allocation2] sm:$0x1] %v18_v0 }
   0x3   :  { %v190_v1 = vld [vmem:[%s1922_s3 + $0x78] sm:$0xff]  ;;  %v189_v3 = vld [vmem:[%s1922_s3 + $0x70] sm:$0xff]  ;;  %v188_v7 = vld [vmem:[%s1922_s3 + $0x68] sm:$0xff] }
   0x4   :  { %v222_v2 = vld [vmem:[%s1922_s3 + $0x178] sm:$0xff]  ;;  %324 = vmatpush.msra.mxu0 %v190_v1  ;;  %v221_v5 = vld [vmem:[%s1922_s3 + $0x170] sm:$0xff]  ;;  %v220_v9 = vld [vmem:[%s1922_s3 + $0x168] sm:$0xff] }
   0x5   :  { %364 = vmatpush.msra.mxu2 %v222_v2  ;;  %v206_v4 = vld [vmem:[%s1922_s3 + $0xf8] sm:$0xff]  ;;  %v205_v8 = vld [vmem:[%s1922_s3 + $0xf0] sm:$0xff]  ;;  %v204_v11 = vld [vmem:[%s1922_s3 + $0xe8] sm:$0xff] }
   0x6   :  { %v238_v6 = vld [vmem:[%s1922_s3 + $0x1f8] sm:$0xff]  ;;  %344 = vmatpush.msra.mxu1 %v206_v4  ;;  %325 = vmatpush.msra.mxu0 %v189_v3  ;;  %v237_v10 = vld [vmem:[%s1922_s3 + $0x1f0] sm:$0xff]  ;;  %v187_v12 = vld [vmem:[%s1922_s3 + $0x60] sm:$0xff] }
   0x7   :  { %384 = vmatpush.msra.mxu3 %v238_v6  ;;  %365 = vmatpush.msra.mxu2 %v221_v5  ;;  %v219_v13 = vld [vmem:[%s1922_s3 + $0x160] sm:$0xff]  ;;  %v236_v14 = vld [vmem:[%s1922_s3 + $0x1e8] sm:$0xff]  ;;  %v186_v17 = vld [vmem:[%s1922_s3 + $0x58] sm:$0xff] }
   0x8   :  { %345 = vmatpush.msra.mxu1 %v205_v8  ;;  %326 = vmatpush.msra.mxu0 %v188_v7  ;;  %v203_v15 = vld [vmem:[%s1922_s3 + $0xe0] sm:$0xff]  ;;  %v218_v18 = vld [vmem:[%s1922_s3 + $0x158] sm:$0xff]  ;;  %v185_v21 = vld [vmem:[%s1922_s3 + $0x50] sm:$0xff] }
   0x9   :  { %385 = vmatpush.msra.mxu3 %v237_v10  ;;  %366 = vmatpush.msra.mxu2 %v220_v9  ;;  %v235_v16 = vld [vmem:[%s1922_s3 + $0x1e0] sm:$0xff]  ;;  %v202_v19 = vld [vmem:[%s1922_s3 + $0xd8] sm:$0xff]  ;;  %v217_v22 = vld [vmem:[%s1922_s3 + $0x150] sm:$0xff] }
   0xa   :  { %346 = vmatpush.msra.mxu1 %v204_v11  ;;  %327 = vmatpush.msra.mxu0 %v187_v12  ;;  %v234_v20 = vld [vmem:[%s1922_s3 + $0x1d8] sm:$0xff]  ;;  %v201_v23 = vld [vmem:[%s1922_s3 + $0xd0] sm:$0xff]  ;;  %v184_v25 = vld [vmem:[%s1922_s3 + $0x48] sm:$0xff] }
   0xb   :  { %386 = vmatpush.msra.mxu3 %v236_v14  ;;  %367 = vmatpush.msra.mxu2 %v219_v13  ;;  %v233_v24 = vld [vmem:[%s1922_s3 + $0x1d0] sm:$0xff]  ;;  %v216_v26 = vld [vmem:[%s1922_s3 + $0x148] sm:$0xff]  ;;  %v183_v29 = vld [vmem:[%s1922_s3 + $0x40] sm:$0xff] }
   0xc   :  { %347 = vmatpush.msra.mxu1 %v203_v15  ;;  %328 = vmatpush.msra.mxu0 %v186_v17  ;;  %v200_v27 = vld [vmem:[%s1922_s3 + $0xc8] sm:$0xff]  ;;  %v215_v30 = vld [vmem:[%s1922_s3 + $0x140] sm:$0xff]  ;;  %v182_v33 = vld [vmem:[%s1922_s3 + $0x38] sm:$0xff] }
   0xd   :  { %387 = vmatpush.msra.mxu3 %v235_v16  ;;  %368 = vmatpush.msra.mxu2 %v218_v18  ;;  %v232_v28 = vld [vmem:[%s1922_s3 + $0x1c8] sm:$0xff]  ;;  %v199_v31 = vld [vmem:[%s1922_s3 + $0xc0] sm:$0xff]  ;;  %v214_v34 = vld [vmem:[%s1922_s3 + $0x138] sm:$0xff] }
   0xe   :  { %348 = vmatpush.msra.mxu1 %v202_v19  ;;  %329 = vmatpush.msra.mxu0 %v185_v21  ;;  %v231_v32 = vld [vmem:[%s1922_s3 + $0x1c0] sm:$0xff]  ;;  %v198_v35 = vld [vmem:[%s1922_s3 + $0xb8] sm:$0xff]  ;;  %v181_v37 = vld [vmem:[%s1922_s3 + $0x30] sm:$0xff] }
   0xf   :  { %388 = vmatpush.msra.mxu3 %v234_v20  ;;  %369 = vmatpush.msra.mxu2 %v217_v22  ;;  %v230_v36 = vld [vmem:[%s1922_s3 + $0x1b8] sm:$0xff]  ;;  %v213_v38 = vld [vmem:[%s1922_s3 + $0x130] sm:$0xff]  ;;  %v180_v41 = vld [vmem:[%s1922_s3 + $0x28] sm:$0xff] }
  0x10   :  { %349 = vmatpush.msra.mxu1 %v201_v23  ;;  %330 = vmatpush.msra.mxu0 %v184_v25  ;;  %v197_v39 = vld [vmem:[%s1922_s3 + $0xb0] sm:$0xff]  ;;  %v212_v42 = vld [vmem:[%s1922_s3 + $0x128] sm:$0xff]  ;;  %v179_v45 = vld [vmem:[%s1922_s3 + $0x20] sm:$0xff] }
  0x11   :  { %389 = vmatpush.msra.mxu3 %v233_v24  ;;  %370 = vmatpush.msra.mxu2 %v216_v26  ;;  %v229_v40 = vld [vmem:[%s1922_s3 + $0x1b0] sm:$0xff]  ;;  %v196_v43 = vld [vmem:[%s1922_s3 + $0xa8] sm:$0xff]  ;;  %v211_v46 = vld [vmem:[%s1922_s3 + $0x120] sm:$0xff] }
  0x12   :  { %350 = vmatpush.msra.mxu1 %v200_v27  ;;  %331 = vmatpush.msra.mxu0 %v183_v29  ;;  %v228_v44 = vld [vmem:[%s1922_s3 + $0x1a8] sm:$0xff]  ;;  %v195_v47 = vld [vmem:[%s1922_s3 + $0xa0] sm:$0xff]  ;;  %v178_v49 = vld [vmem:[%s1922_s3 + $0x18] sm:$0xff] }
  0x13   :  { %390 = vmatpush.msra.mxu3 %v232_v28  ;;  %371 = vmatpush.msra.mxu2 %v215_v30  ;;  %v227_v48 = vld [vmem:[%s1922_s3 + $0x1a0] sm:$0xff]  ;;  %v210_v50 = vld [vmem:[%s1922_s3 + $0x118] sm:$0xff]  ;;  %v177_v53 = vld [vmem:[%s1922_s3 + $0x10] sm:$0xff] }
  0x14   :  { %351 = vmatpush.msra.mxu1 %v199_v31  ;;  %332 = vmatpush.msra.mxu0 %v182_v33  ;;  %v194_v51 = vld [vmem:[%s1922_s3 + $0x98] sm:$0xff]  ;;  %v209_v54 = vld [vmem:[%s1922_s3 + $0x110] sm:$0xff]  ;;  %v176_v57 = vld [vmem:[%s1922_s3 + $0x8] sm:$0xff] }
  0x15   :  { %391 = vmatpush.msra.mxu3 %v231_v32  ;;  %372 = vmatpush.msra.mxu2 %v214_v34  ;;  %v226_v52 = vld [vmem:[%s1922_s3 + $0x198] sm:$0xff]  ;;  %v193_v55 = vld [vmem:[%s1922_s3 + $0x90] sm:$0xff]  ;;  %v208_v58 = vld [vmem:[%s1922_s3 + $0x108] sm:$0xff] }
  0x16   :  { %352 = vmatpush.msra.mxu1 %v198_v35  ;;  %333 = vmatpush.msra.mxu0 %v181_v37  ;;  %v225_v56 = vld [vmem:[%s1922_s3 + $0x190] sm:$0xff]  ;;  %v192_v59 = vld [vmem:[%s1922_s3 + $0x88] sm:$0xff]  ;;  %v175_v61 = vld [vmem:[%s1922_s3] sm:$0xff] }
  0x17   :  { %392 = vmatpush.msra.mxu3 %v230_v36  ;;  %373 = vmatpush.msra.mxu2 %v213_v38  ;;  %v224_v60 = vld [vmem:[%s1922_s3 + $0x188] sm:$0xff]  ;;  %v207_v62 = vld [vmem:[%s1922_s3 + $0x100] sm:$0xff]  ;;  %v254_v63 = vld [vmem:[%s1922_s3 + $0x278] sm:$0xff] }
  0x18   :  { %353 = vmatpush.msra.mxu1 %v197_v39  ;;  %334 = vmatpush.msra.mxu0 %v180_v41  ;;  %v286_v0 = vld [vmem:[%s1922_s3 + $0x378] sm:$0xff]  ;;  %v191_v1 = vld [vmem:[%s1922_s3 + $0x80] sm:$0xff]  ;;  %v253_v3 = vld [vmem:[%s1922_s3 + $0x270] sm:$0xff] }
  0x19   :  { %393 = vmatpush.msra.mxu3 %v229_v40  ;;  %374 = vmatpush.msra.mxu2 %v212_v42  ;;  %v223_v2 = vld [vmem:[%s1922_s3 + $0x180] sm:$0xff]  ;;  %v270_v4 = vld [vmem:[%s1922_s3 + $0x2f8] sm:$0xff]  ;;  %v285_v5 = vld [vmem:[%s1922_s3 + $0x370] sm:$0xff] }
  0x1a   :  { %354 = vmatpush.msra.mxu1 %v196_v43  ;;  %335 = vmatpush.msra.mxu0 %v179_v45  ;;  %v302_v6 = vld [vmem:[%s1922_s3 + $0x3f8] sm:$0xff]  ;;  %v252_v7 = vld [vmem:[%s1922_s3 + $0x268] sm:$0xff]  ;;  %v269_v8 = vld [vmem:[%s1922_s3 + $0x2f0] sm:$0xff] }
  0x1b   :  { %394 = vmatpush.msra.mxu3 %v228_v44  ;;  %375 = vmatpush.msra.mxu2 %v211_v46  ;;  %v284_v9 = vld [vmem:[%s1922_s3 + $0x368] sm:$0xff]  ;;  %v301_v10 = vld [vmem:[%s1922_s3 + $0x3f0] sm:$0xff]  ;;  %v251_v11 = vld [vmem:[%s1922_s3 + $0x260] sm:$0xff] }
  0x1c   :  { %355 = vmatpush.msra.mxu1 %v195_v47  ;;  %336 = vmatpush.msra.mxu0 %v178_v49  ;;  %v268_v12 = vld [vmem:[%s1922_s3 + $0x2e8] sm:$0xff]  ;;  %v283_v13 = vld [vmem:[%s1922_s3 + $0x360] sm:$0xff]  ;;  %v250_v15 = vld [vmem:[%s1922_s3 + $0x258] sm:$0xff] }
  0x1d   :  { %395 = vmatpush.msra.mxu3 %v227_v48  ;;  %376 = vmatpush.msra.mxu2 %v210_v50  ;;  %v300_v14 = vld [vmem:[%s1922_s3 + $0x3e8] sm:$0xff]  ;;  %v267_v16 = vld [vmem:[%s1922_s3 + $0x2e0] sm:$0xff]  ;;  %v282_v17 = vld [vmem:[%s1922_s3 + $0x358] sm:$0xff] }
  0x1e   :  { %356 = vmatpush.msra.mxu1 %v194_v51  ;;  %337 = vmatpush.msra.mxu0 %v177_v53  ;;  %v299_v18 = vld [vmem:[%s1922_s3 + $0x3e0] sm:$0xff]  ;;  %v249_v19 = vld [vmem:[%s1922_s3 + $0x250] sm:$0xff]  ;;  %v266_v20 = vld [vmem:[%s1922_s3 + $0x2d8] sm:$0xff] }
  0x1f   :  { %396 = vmatpush.msra.mxu3 %v226_v52  ;;  %377 = vmatpush.msra.mxu2 %v209_v54  ;;  %v281_v21 = vld [vmem:[%s1922_s3 + $0x350] sm:$0xff]  ;;  %v298_v22 = vld [vmem:[%s1922_s3 + $0x3d8] sm:$0xff]  ;;  %v173_v23 = vld [vmem:[%s1920_s1] sm:$0xff] }
  0x20   :  { %357 = vmatpush.msra.mxu1 %v193_v55  ;;  %338 = vmatpush.msra.mxu0 %v176_v57  ;;  %v248_v24 = vld [vmem:[%s1922_s3 + $0x248] sm:$0xff]  ;;  %v265_v25 = vld [vmem:[%s1922_s3 + $0x2d0] sm:$0xff]  ;;  %305 = vst [vmem:[#allocation1] ss:$4 sm:$0xff] %v173_v23  ;;  %v247_v28 = vld [vmem:[%s1922_s3 + $0x240] sm:$0xff] }
  0x21   :  { %397 = vmatpush.msra.mxu3 %v225_v56  ;;  %378 = vmatpush.msra.mxu2 %v208_v58  ;;  %v280_v26 = vld [vmem:[%s1922_s3 + $0x348] sm:$0xff]  ;;  %v297_v27 = vld [vmem:[%s1922_s3 + $0x3d0] sm:$0xff]  ;;  %v279_v30 = vld [vmem:[%s1922_s3 + $0x340] sm:$0xff] }
  0x22   :  { %358 = vmatpush.msra.mxu1 %v192_v59  ;;  %339 = vmatpush.msra.mxu0 %v175_v61  ;;  %v264_v29 = vld [vmem:[%s1922_s3 + $0x2c8] sm:$0xff]  ;;  %v246_v32 = vld [vmem:[%s1922_s3 + $0x238] sm:$0xff]  ;;  %v263_v33 = vld [vmem:[%s1922_s3 + $0x2c0] sm:$0xff] }
  0x23   :  { %398 = vmatpush.msra.mxu3 %v224_v60  ;;  %379 = vmatpush.msra.mxu2 %v207_v62  ;;  %v296_v31 = vld [vmem:[%s1922_s3 + $0x3c8] sm:$0xff]  ;;  %v278_v34 = vld [vmem:[%s1922_s3 + $0x338] sm:$0xff]  ;;  %v295_v35 = vld [vmem:[%s1922_s3 + $0x3c0] sm:$0xff] }
  0x24   :  { %404 = vmatpush.msrb.mxu0 %v254_v63  ;;  %359 = vmatpush.msra.mxu1 %v191_v1  ;;  %v245_v36 = vld [vmem:[%s1922_s3 + $0x230] sm:$0xff]  ;;  %v262_v37 = vld [vmem:[%s1922_s3 + $0x2b8] sm:$0xff]  ;;  %v174_v40 = vld [vmem:[%s1920_s1 + $0x8] sm:$0xff] }
  0x25   :  { %444 = vmatpush.msrb.mxu2 %v286_v0  ;;  %399 = vmatpush.msra.mxu3 %v223_v2  ;;  %v277_v38 = vld [vmem:[%s1922_s3 + $0x330] sm:$0xff]  ;;  %v294_v39 = vld [vmem:[%s1922_s3 + $0x3b8] sm:$0xff]  ;;  %v244_v41 = vld [vmem:[%s1922_s3 + $0x228] sm:$0xff]  ;;  %307 = vst [vmem:[#allocation1 + $0x20] ss:$4 sm:$0xff] %v174_v40 }
  0x26   :  { %405 = vmatpush.msrb.mxu0 %v253_v3  ;;  %424 = vmatpush.msrb.mxu1 %v270_v4  ;;  %v261_v42 = vld [vmem:[%s1922_s3 + $0x2b0] sm:$0xff]  ;;  %v43_v43 = vld [vmem:[%s1919_s0] sm:$0xff]  ;;  %v276_v44 = vld [vmem:[%s1922_s3 + $0x328] sm:$0xff] }
  0x27   :  { %445 = vmatpush.msrb.mxu2 %v285_v5  ;;  %464 = vmatpush.msrb.mxu3 %v302_v6  ;;  %v310_v45 = vld.sshfl [vmem:[#allocation1 + $0x10] sm:$0xff pattern:$0x73625140]  ;;  %v1320_v46 = vld.sshfl [vmem:[#allocation1] sm:$0xff pattern:$0x73625140] }
  0x28   :  { %406 = vmatpush.msrb.mxu0 %v252_v7  ;;  %425 = vmatpush.msrb.mxu1 %v269_v8  ;;  %v1322_v47 = vld.sshfl [vmem:[#allocation1 + $0x18] sm:$0xff pattern:$0x73625140]  ;;  %v1324_v48 = vld.sshfl [vmem:[#allocation1 + $0x8] sm:$0xff pattern:$0x73625140] }
  0x29   :  { %446 = vmatpush.msrb.mxu2 %v284_v9  ;;  %465 = vmatpush.msrb.mxu3 %v301_v10  ;;  %v293_v49 = vld [vmem:[%s1922_s3 + $0x3b0] sm:$0xff]  ;;  %v243_v50 = vld [vmem:[%s1922_s3 + $0x220] sm:$0xff]  ;;  %v260_v51 = vld [vmem:[%s1922_s3 + $0x2a8] sm:$0xff]  ;;  %486 = vst [vmem:[#allocation1] ss:$4 sm:$0xff] %v43_v43 }
  0x2a   :  { %407 = vmatpush.msrb.mxu0 %v251_v11  ;;  %426 = vmatpush.msrb.mxu1 %v268_v12  ;;  %v275_v52 = vld [vmem:[%s1922_s3 + $0x320] sm:$0xff]  ;;  %v292_v53 = vld [vmem:[%s1922_s3 + $0x3a8] sm:$0xff]  ;;  %v242_v54 = vld [vmem:[%s1922_s3 + $0x218] sm:$0xff] }
  0x2b   :  { %447 = vmatpush.msrb.mxu2 %v283_v13  ;;  %466 = vmatpush.msrb.mxu3 %v300_v14  ;;  %v259_v55 = vld [vmem:[%s1922_s3 + $0x2a0] sm:$0xff]  ;;  %v274_v56 = vld [vmem:[%s1922_s3 + $0x318] sm:$0xff]  ;;  %v241_v58 = vld [vmem:[%s1922_s3 + $0x210] sm:$0xff] }
  0x2c   :  { %408 = vmatpush.msrb.mxu0 %v250_v15  ;;  %427 = vmatpush.msrb.mxu1 %v267_v16  ;;  %v291_v57 = vld [vmem:[%s1922_s3 + $0x3a0] sm:$0xff]  ;;  %v258_v59 = vld [vmem:[%s1922_s3 + $0x298] sm:$0xff]  ;;  %v44_v60 = vld [vmem:[%s1919_s0 + $0x8] sm:$0xff] }
  0x2d   :  { %448 = vmatpush.msrb.mxu2 %v282_v17  ;;  %467 = vmatpush.msrb.mxu3 %v299_v18  ;;  %v1362_v61 = vld.sshfl [vmem:[#allocation1 + $0x30] sm:$0xff pattern:$0x73625140]  ;;  %v1364_v62 = vld.sshfl [vmem:[#allocation1 + $0x20] sm:$0xff pattern:$0x73625140] }
  0x2e   :  { %409 = vmatpush.msrb.mxu0 %v249_v19  ;;  %428 = vmatpush.msrb.mxu1 %v266_v20  ;;  %v1366_v63 = vld.sshfl [vmem:[#allocation1 + $0x38] sm:$0xff pattern:$0x73625140]  ;;  %v1368_v0 = vld.sshfl [vmem:[#allocation1 + $0x28] sm:$0xff pattern:$0x73625140] }
  0x2f   :  { %449 = vmatpush.msrb.mxu2 %v281_v21  ;;  %468 = vmatpush.msrb.mxu3 %v298_v22  ;;  %v273_v1 = vld [vmem:[%s1922_s3 + $0x310] sm:$0xff]  ;;  %v290_v2 = vld [vmem:[%s1922_s3 + $0x398] sm:$0xff]  ;;  %488 = vst [vmem:[#allocation1 + $0x20] ss:$4 sm:$0xff] %v44_v60  ;;  %v240_v3 = vld [vmem:[%s1922_s3 + $0x208] sm:$0xff] }
  0x30   :  { %410 = vmatpush.msrb.mxu0 %v248_v24  ;;  %429 = vmatpush.msrb.mxu1 %v265_v25  ;;  %v257_v4 = vld [vmem:[%s1922_s3 + $0x290] sm:$0xff]  ;;  %v272_v5 = vld [vmem:[%s1922_s3 + $0x308] sm:$0xff]  ;;  %v239_v7 = vld [vmem:[%s1922_s3 + $0x200] sm:$0xff] }
  0x31   :  { %450 = vmatpush.msrb.mxu2 %v280_v26  ;;  %469 = vmatpush.msrb.mxu3 %v297_v27  ;;  %v289_v6 = vld [vmem:[%s1922_s3 + $0x390] sm:$0xff]  ;;  %v256_v8 = vld [vmem:[%s1922_s3 + $0x288] sm:$0xff]  ;;  %v271_v9 = vld [vmem:[%s1922_s3 + $0x300] sm:$0xff] }
  0x32   :  { %411 = vmatpush.msrb.mxu0 %v247_v28  ;;  %430 = vmatpush.msrb.mxu1 %v264_v29  ;;  %v288_v10 = vld [vmem:[%s1922_s3 + $0x388] sm:$0xff]  ;;  %v60_v11 = vld [vmem:[%s1921_s2 + $0x78] sm:$0xff]  ;;  %v255_v13 = vld [vmem:[%s1922_s3 + $0x280] sm:$0xff] }
  0x33   :  { %451 = vmatpush.msrb.mxu2 %v279_v30  ;;  %470 = vmatpush.msrb.mxu3 %v296_v31  ;;  %v92_v12 = vld [vmem:[%s1921_s2 + $0x178] sm:$0xff]  ;;  %v287_v14 = vld [vmem:[%s1922_s3 + $0x380] sm:$0xff]  ;;  %v59_v15 = vld [vmem:[%s1921_s2 + $0x70] sm:$0xff] }
  0x34   :  { %412 = vmatpush.msrb.mxu0 %v246_v32  ;;  %431 = vmatpush.msrb.mxu1 %v263_v33  ;;  %v76_v16 = vld [vmem:[%s1921_s2 + $0xf8] sm:$0xff]  ;;  %v91_v17 = vld [vmem:[%s1921_s2 + $0x170] sm:$0xff]  ;;  %v58_v19 = vld [vmem:[%s1921_s2 + $0x68] sm:$0xff] }
  0x35   :  { %452 = vmatpush.msrb.mxu2 %v278_v34  ;;  %471 = vmatpush.msrb.mxu3 %v295_v35  ;;  %v108_v18 = vld [vmem:[%s1921_s2 + $0x1f8] sm:$0xff]  ;;  %v75_v20 = vld [vmem:[%s1921_s2 + $0xf0] sm:$0xff]  ;;  %v90_v21 = vld [vmem:[%s1921_s2 + $0x168] sm:$0xff] }
  0x36   :  { %413 = vmatpush.msrb.mxu0 %v245_v36  ;;  %432 = vmatpush.msrb.mxu1 %v262_v37  ;;  %v107_v22 = vld [vmem:[%s1921_s2 + $0x1f0] sm:$0xff]  ;;  %v57_v23 = vld [vmem:[%s1921_s2 + $0x60] sm:$0xff]  ;;  %v74_v24 = vld [vmem:[%s1921_s2 + $0xe8] sm:$0xff] }
  0x37   :  { %453 = vmatpush.msrb.mxu2 %v277_v38  ;;  %472 = vmatpush.msrb.mxu3 %v294_v39  ;;  %v89_v25 = vld [vmem:[%s1921_s2 + $0x160] sm:$0xff]  ;;  %v106_v26 = vld [vmem:[%s1921_s2 + $0x1e8] sm:$0xff]  ;;  %v56_v27 = vld [vmem:[%s1921_s2 + $0x58] sm:$0xff] }
  0x38   :  { %414 = vmatpush.msrb.mxu0 %v244_v41  ;;  %433 = vmatpush.msrb.mxu1 %v261_v42  ;;  %v73_v28 = vld [vmem:[%s1921_s2 + $0xe0] sm:$0xff]  ;;  %v88_v29 = vld [vmem:[%s1921_s2 + $0x158] sm:$0xff] }
  0x39   :  { %454 = vmatpush.msrb.mxu2 %v276_v44  ;;  %473 = vmatpush.msrb.mxu3 %v293_v49 }
  0x3a   :  { %415 = vmatpush.msrb.mxu0 %v243_v50  ;;  %434 = vmatpush.msrb.mxu1 %v260_v51 }
  0x3b   :  { %455 = vmatpush.msrb.mxu2 %v275_v52  ;;  %474 = vmatpush.msrb.mxu3 %v292_v53 }
  0x3c   :  { %416 = vmatpush.msrb.mxu0 %v242_v54  ;;  %435 = vmatpush.msrb.mxu1 %v259_v55 }
  0x3d   :  { %456 = vmatpush.msrb.mxu2 %v274_v56  ;;  %475 = vmatpush.msrb.mxu3 %v291_v57 }
  0x3e   :  { %417 = vmatpush.msrb.mxu0 %v241_v58  ;;  %436 = vmatpush.msrb.mxu1 %v258_v59 }
  0x3f   :  { %457 = vmatpush.msrb.mxu2 %v273_v1  ;;  %476 = vmatpush.msrb.mxu3 %v290_v2 }
  0x40   :  { %418 = vmatpush.msrb.mxu0 %v240_v3  ;;  %437 = vmatpush.msrb.mxu1 %v257_v4 }
  0x41   :  { %458 = vmatpush.msrb.mxu2 %v272_v5  ;;  %477 = vmatpush.msrb.mxu3 %v289_v6 }
  0x42   :  { %380 = vmatmul.f32.vlgmr.msra.gmra.mxu2 %v310_v45  ;;  %419 = vmatpush.msrb.mxu0 %v239_v7 }
  0x43   :  { %438 = vmatpush.msrb.mxu1 %v256_v8  ;;  %459 = vmatpush.msrb.mxu2 %v271_v9 }
  0x44   :  { %478 = vmatpush.msrb.mxu3 %v288_v10  ;;  %340 = vmatmul.f32.vlgmr.msra.gmra.mxu0 %v1320_v46 }
  0x45   :  { %400 = vmatmul.f32.vlgmr.msra.gmra.mxu3 %v1322_v47  ;;  %505 = vmatpush.msra.mxu0 %v60_v11 }
  0x46   :  { %545 = vmatpush.msra.mxu2 %v92_v12  ;;  %439 = vmatpush.msrb.mxu1 %v255_v13 }
  0x47   :  { %479 = vmatpush.msrb.mxu3 %v287_v14  ;;  %360 = vmatmul.f32.vlgmr.msra.gmra.mxu1 %v1324_v48 }
  0x48   :  { %506 = vmatpush.msra.mxu0 %v59_v15  ;;  %525 = vmatpush.msra.mxu1 %v76_v16 }
  0x49   :  { %546 = vmatpush.msra.mxu2 %v91_v17  ;;  %565 = vmatpush.msra.mxu3 %v108_v18 }
  0x4a   :  { %507 = vmatpush.msra.mxu0 %v58_v19  ;;  %526 = vmatpush.msra.mxu1 %v75_v20 }
  0x4b   :  { %547 = vmatpush.msra.mxu2 %v90_v21  ;;  %566 = vmatpush.msra.mxu3 %v107_v22 }
  0x4c   :  { %460 = vmatmul.f32.vlgmr.msrb.gmra.mxu2 %v1362_v61  ;;  %508 = vmatpush.msra.mxu0 %v57_v23 }
  0x4d   :  { %527 = vmatpush.msra.mxu1 %v74_v24  ;;  %548 = vmatpush.msra.mxu2 %v89_v25 }
  0x4e   :  { %20 = vsyncpa [#allocation4], 0  ;;  %567 = vmatpush.msra.mxu3 %v106_v26  ;;  %420 = vmatmul.f32.vlgmr.msrb.gmra.mxu0 %v1364_v62  ;;  %v105_v30 = vld [vmem:[%s1921_s2 + $0x1e0] sm:$0xff]  ;;  %v55_v31 = vld [vmem:[%s1921_s2 + $0x50] sm:$0xff]  ;;  %vm713_vm0 = vcmask 523264   ;;  %vm836_vm1 = vcmask 1041408  }
  0x4f   :  { %480 = vmatmul.f32.vlgmr.msrb.gmra.mxu3 %v1366_v63  ;;  %509 = vmatpush.msra.mxu0 %v56_v27  ;;  %v72_v32 = vld [vmem:[%s1921_s2 + $0xd8] sm:$0xff]  ;;  %v87_v33 = vld [vmem:[%s1921_s2 + $0x150] sm:$0xff]  ;;  %v54_v35 = vld [vmem:[%s1921_s2 + $0x48] sm:$0xff]  ;;  %vm838_vm2 = vcmask 1045508   ;;  %vm840_vm3 = vcmask 1043456   ;;  %s883_s30 = sshll.u32 %s1931_s12, 4  ;;  %s884_s30 = int_to_ptr.hbm [resolvable:$true] %s883_s30 }
  0x50   :  { %528 = vmatpush.msra.mxu1 %v73_v28  ;;  %549 = vmatpush.msra.mxu2 %v88_v29  ;;  %v104_v34 = vld [vmem:[%s1921_s2 + $0x1d8] sm:$0xff]  ;;  %v71_v36 = vld [vmem:[%s1921_s2 + $0xd0] sm:$0xff]  ;;  %v86_v37 = vld [vmem:[%s1921_s2 + $0x148] sm:$0xff]  ;;  %vm872_vm4 = vcmask 1024  }
  0x51   :  { %568 = vmatpush.msra.mxu3 %v105_v30  ;;  %440 = vmatmul.f32.vlgmr.msrb.gmra.mxu1 %v1368_v0  ;;  %v103_v38 = vld [vmem:[%s1921_s2 + $0x1d0] sm:$0xff]  ;;  %v53_v39 = vld [vmem:[%s1921_s2 + $0x40] sm:$0xff]  ;;  %v70_v40 = vld [vmem:[%s1921_s2 + $0xc8] sm:$0xff] }
  0x52   :  { %510 = vmatpush.msra.mxu0 %v55_v31  ;;  %529 = vmatpush.msra.mxu1 %v72_v32  ;;  %v85_v41 = vld [vmem:[%s1921_s2 + $0x140] sm:$0xff]  ;;  %v102_v42 = vld [vmem:[%s1921_s2 + $0x1c8] sm:$0xff]  ;;  %v52_v43 = vld [vmem:[%s1921_s2 + $0x38] sm:$0xff] }
  0x53   :  { %550 = vmatpush.msra.mxu2 %v87_v33  ;;  %569 = vmatpush.msra.mxu3 %v104_v34  ;;  %v69_v44 = vld [vmem:[%s1921_s2 + $0xc0] sm:$0xff]  ;;  %v84_v45 = vld [vmem:[%s1921_s2 + $0x138] sm:$0xff]  ;;  %v51_v47 = vld [vmem:[%s1921_s2 + $0x30] sm:$0xff] }
  0x54   :  { %511 = vmatpush.msra.mxu0 %v54_v35  ;;  %530 = vmatpush.msra.mxu1 %v71_v36  ;;  %v101_v46 = vld [vmem:[%s1921_s2 + $0x1c0] sm:$0xff]  ;;  %v68_v48 = vld [vmem:[%s1921_s2 + $0xb8] sm:$0xff]  ;;  %v83_v49 = vld [vmem:[%s1921_s2 + $0x130] sm:$0xff] }
  0x55   :  { %551 = vmatpush.msra.mxu2 %v86_v37  ;;  %570 = vmatpush.msra.mxu3 %v103_v38  ;;  %v100_v50 = vld [vmem:[%s1921_s2 + $0x1b8] sm:$0xff]  ;;  %v50_v51 = vld [vmem:[%s1921_s2 + $0x28] sm:$0xff]  ;;  %v67_v52 = vld [vmem:[%s1921_s2 + $0xb0] sm:$0xff] }
  0x56   :  { %512 = vmatpush.msra.mxu0 %v53_v39  ;;  %531 = vmatpush.msra.mxu1 %v70_v40  ;;  %v82_v53 = vld [vmem:[%s1921_s2 + $0x128] sm:$0xff]  ;;  %v99_v54 = vld [vmem:[%s1921_s2 + $0x1b0] sm:$0xff]  ;;  %v49_v55 = vld [vmem:[%s1921_s2 + $0x20] sm:$0xff] }
  0x57   :  { %552 = vmatpush.msra.mxu2 %v85_v41  ;;  %571 = vmatpush.msra.mxu3 %v102_v42  ;;  %v66_v56 = vld [vmem:[%s1921_s2 + $0xa8] sm:$0xff]  ;;  %v81_v57 = vld [vmem:[%s1921_s2 + $0x120] sm:$0xff]  ;;  %v48_v59 = vld [vmem:[%s1921_s2 + $0x18] sm:$0xff] }
  0x58   :  { %513 = vmatpush.msra.mxu0 %v52_v43  ;;  %532 = vmatpush.msra.mxu1 %v69_v44  ;;  %v98_v58 = vld [vmem:[%s1921_s2 + $0x1a8] sm:$0xff]  ;;  %v65_v60 = vld [vmem:[%s1921_s2 + $0xa0] sm:$0xff]  ;;  %v80_v61 = vld [vmem:[%s1921_s2 + $0x118] sm:$0xff] }
  0x59   :  { %553 = vmatpush.msra.mxu2 %v84_v45  ;;  %572 = vmatpush.msra.mxu3 %v101_v46  ;;  %v97_v62 = vld [vmem:[%s1921_s2 + $0x1a0] sm:$0xff]  ;;  %v47_v63 = vld [vmem:[%s1921_s2 + $0x10] sm:$0xff]  ;;  %v64_v0 = vld [vmem:[%s1921_s2 + $0x98] sm:$0xff] }
  0x5a   :  { %514 = vmatpush.msra.mxu0 %v51_v47  ;;  %533 = vmatpush.msra.mxu1 %v68_v48  ;;  %v79_v1 = vld [vmem:[%s1921_s2 + $0x110] sm:$0xff]  ;;  %v96_v2 = vld [vmem:[%s1921_s2 + $0x198] sm:$0xff]  ;;  %v46_v3 = vld [vmem:[%s1921_s2 + $0x8] sm:$0xff] }
  0x5b   :  { %554 = vmatpush.msra.mxu2 %v83_v49  ;;  %573 = vmatpush.msra.mxu3 %v100_v50  ;;  %v63_v4 = vld [vmem:[%s1921_s2 + $0x90] sm:$0xff]  ;;  %v78_v5 = vld [vmem:[%s1921_s2 + $0x108] sm:$0xff]  ;;  %v45_v7 = vld [vmem:[%s1921_s2] sm:$0xff] }
  0x5c   :  { %515 = vmatpush.msra.mxu0 %v50_v51  ;;  %534 = vmatpush.msra.mxu1 %v67_v52  ;;  %v95_v6 = vld [vmem:[%s1921_s2 + $0x190] sm:$0xff]  ;;  %v62_v8 = vld [vmem:[%s1921_s2 + $0x88] sm:$0xff]  ;;  %v77_v9 = vld [vmem:[%s1921_s2 + $0x100] sm:$0xff] }
  0x5d   :  { %555 = vmatpush.msra.mxu2 %v82_v53  ;;  %574 = vmatpush.msra.mxu3 %v99_v54  ;;  %v94_v10 = vld [vmem:[%s1921_s2 + $0x188] sm:$0xff]  ;;  %v489_v11 = vld.sshfl [vmem:[#allocation1] sm:$0xff pattern:$0x73625140]  ;;  %v124_v13 = vld [vmem:[%s1921_s2 + $0x278] sm:$0xff] }
  0x5e   :  { %516 = vmatpush.msra.mxu0 %v49_v55  ;;  %535 = vmatpush.msra.mxu1 %v66_v56  ;;  %v491_v12 = vld.sshfl [vmem:[#allocation1 + $0x10] sm:$0xff pattern:$0x73625140]  ;;  %v156_v14 = vld [vmem:[%s1921_s2 + $0x378] sm:$0xff]  ;;  %v61_v15 = vld [vmem:[%s1921_s2 + $0x80] sm:$0xff] }
  0x5f   :  { %556 = vmatpush.msra.mxu2 %v81_v57  ;;  %575 = vmatpush.msra.mxu3 %v98_v58  ;;  %v93_v16 = vld [vmem:[%s1921_s2 + $0x180] sm:$0xff]  ;;  %v490_v17 = vld.sshfl [vmem:[#allocation1 + $0x8] sm:$0xff pattern:$0x73625140]  ;;  %v123_v19 = vld [vmem:[%s1921_s2 + $0x270] sm:$0xff] }
  0x60   :  { %517 = vmatpush.msra.mxu0 %v48_v59  ;;  %536 = vmatpush.msra.mxu1 %v65_v60  ;;  %v492_v18 = vld.sshfl [vmem:[#allocation1 + $0x18] sm:$0xff pattern:$0x73625140]  ;;  %v155_v21 = vld [vmem:[%s1921_s2 + $0x370] sm:$0xff]  ;;  %v122_v23 = vld [vmem:[%s1921_s2 + $0x268] sm:$0xff] }
  0x61   :  { %557 = vmatpush.msra.mxu2 %v80_v61  ;;  %576 = vmatpush.msra.mxu3 %v97_v62  ;;  %v140_v20 = vld [vmem:[%s1921_s2 + $0x2f8] sm:$0xff]  ;;  %v139_v24 = vld [vmem:[%s1921_s2 + $0x2f0] sm:$0xff]  ;;  %v154_v25 = vld [vmem:[%s1921_s2 + $0x368] sm:$0xff] }
  0x62   :  { %518 = vmatpush.msra.mxu0 %v47_v63  ;;  %537 = vmatpush.msra.mxu1 %v64_v0  ;;  %v172_v22 = vld [vmem:[%s1921_s2 + $0x3f8] sm:$0xff]  ;;  %v171_v26 = vld [vmem:[%s1921_s2 + $0x3f0] sm:$0xff]  ;;  %v121_v27 = vld [vmem:[%s1921_s2 + $0x260] sm:$0xff] }
  0x63   :  { %558 = vmatpush.msra.mxu2 %v79_v1  ;;  %577 = vmatpush.msra.mxu3 %v96_v2  ;;  %v138_v28 = vld [vmem:[%s1921_s2 + $0x2e8] sm:$0xff]  ;;  %v153_v29 = vld [vmem:[%s1921_s2 + $0x360] sm:$0xff]  ;;  %v120_v31 = vld [vmem:[%s1921_s2 + $0x258] sm:$0xff] }
  0x64   :  { %519 = vmatpush.msra.mxu0 %v46_v3  ;;  %538 = vmatpush.msra.mxu1 %v63_v4  ;;  %v170_v30 = vld [vmem:[%s1921_s2 + $0x3e8] sm:$0xff]  ;;  %v137_v32 = vld [vmem:[%s1921_s2 + $0x2e0] sm:$0xff]  ;;  %v152_v33 = vld [vmem:[%s1921_s2 + $0x358] sm:$0xff] }
  0x65   :  { %559 = vmatpush.msra.mxu2 %v78_v5  ;;  %578 = vmatpush.msra.mxu3 %v95_v6  ;;  %v169_v34 = vld [vmem:[%s1921_s2 + $0x3e0] sm:$0xff]  ;;  %v119_v35 = vld [vmem:[%s1921_s2 + $0x250] sm:$0xff]  ;;  %v136_v36 = vld [vmem:[%s1921_s2 + $0x2d8] sm:$0xff] }
  0x66   :  { %520 = vmatpush.msra.mxu0 %v45_v7  ;;  %539 = vmatpush.msra.mxu1 %v62_v8  ;;  %v151_v37 = vld [vmem:[%s1921_s2 + $0x350] sm:$0xff]  ;;  %v168_v38 = vld [vmem:[%s1921_s2 + $0x3d8] sm:$0xff]  ;;  %v118_v39 = vld [vmem:[%s1921_s2 + $0x248] sm:$0xff] }
  0x67   :  { %560 = vmatpush.msra.mxu2 %v77_v9  ;;  %579 = vmatpush.msra.mxu3 %v94_v10  ;;  %v135_v40 = vld [vmem:[%s1921_s2 + $0x2d0] sm:$0xff]  ;;  %v150_v41 = vld [vmem:[%s1921_s2 + $0x348] sm:$0xff]  ;;  %v117_v43 = vld [vmem:[%s1921_s2 + $0x240] sm:$0xff] }
  0x68   :  { %521 = vmatmul.f32.vlgmr.msra.gmra.mxu0 %v489_v11  ;;  %561 = vmatmul.f32.vlgmr.msra.gmra.mxu2 %v491_v12  ;;  %v167_v42 = vld [vmem:[%s1921_s2 + $0x3d0] sm:$0xff]  ;;  %v134_v44 = vld [vmem:[%s1921_s2 + $0x2c8] sm:$0xff]  ;;  %v149_v45 = vld [vmem:[%s1921_s2 + $0x340] sm:$0xff] }
  0x69   :  { %585 = vmatpush.msrb.mxu0 %v124_v13  ;;  %625 = vmatpush.msrb.mxu2 %v156_v14  ;;  %v166_v46 = vld [vmem:[%s1921_s2 + $0x3c8] sm:$0xff]  ;;  %v116_v47 = vld [vmem:[%s1921_s2 + $0x238] sm:$0xff]  ;;  %v133_v48 = vld [vmem:[%s1921_s2 + $0x2c0] sm:$0xff] }
  0x6a   :  { %540 = vmatpush.msra.mxu1 %v61_v15  ;;  %580 = vmatpush.msra.mxu3 %v93_v16  ;;  %v148_v49 = vld [vmem:[%s1921_s2 + $0x338] sm:$0xff]  ;;  %v165_v50 = vld [vmem:[%s1921_s2 + $0x3c0] sm:$0xff]  ;;  %v115_v51 = vld [vmem:[%s1921_s2 + $0x230] sm:$0xff] }
  0x6b   :  { %541 = vmatmul.f32.vlgmr.msra.gmra.mxu1 %v490_v17  ;;  %581 = vmatmul.f32.vlgmr.msra.gmra.mxu3 %v492_v18  ;;  %v132_v52 = vld [vmem:[%s1921_s2 + $0x2b8] sm:$0xff]  ;;  %v147_v53 = vld [vmem:[%s1921_s2 + $0x330] sm:$0xff]  ;;  %v114_v55 = vld [vmem:[%s1921_s2 + $0x228] sm:$0xff] }
  0x6c   :  { %586 = vmatpush.msrb.mxu0 %v123_v19  ;;  %605 = vmatpush.msrb.mxu1 %v140_v20  ;;  %v164_v54 = vld [vmem:[%s1921_s2 + $0x3b8] sm:$0xff]  ;;  %v131_v56 = vld [vmem:[%s1921_s2 + $0x2b0] sm:$0xff]  ;;  %v146_v57 = vld [vmem:[%s1921_s2 + $0x328] sm:$0xff] }
  0x6d   :  { %626 = vmatpush.msrb.mxu2 %v155_v21  ;;  %645 = vmatpush.msrb.mxu3 %v172_v22  ;;  %v163_v58 = vld [vmem:[%s1921_s2 + $0x3b0] sm:$0xff]  ;;  %v113_v59 = vld [vmem:[%s1921_s2 + $0x220] sm:$0xff]  ;;  %v130_v60 = vld [vmem:[%s1921_s2 + $0x2a8] sm:$0xff] }
  0x6e   :  { %587 = vmatpush.msrb.mxu0 %v122_v23  ;;  %606 = vmatpush.msrb.mxu1 %v139_v24  ;;  %v145_v61 = vld [vmem:[%s1921_s2 + $0x320] sm:$0xff]  ;;  %v162_v62 = vld [vmem:[%s1921_s2 + $0x3a8] sm:$0xff]  ;;  %v112_v63 = vld [vmem:[%s1921_s2 + $0x218] sm:$0xff] }
  0x6f   :  { %627 = vmatpush.msrb.mxu2 %v154_v25  ;;  %646 = vmatpush.msrb.mxu3 %v171_v26  ;;  %v129_v0 = vld [vmem:[%s1921_s2 + $0x2a0] sm:$0xff]  ;;  %v144_v1 = vld [vmem:[%s1921_s2 + $0x318] sm:$0xff]  ;;  %v111_v3 = vld [vmem:[%s1921_s2 + $0x210] sm:$0xff] }
  0x70   :  { %588 = vmatpush.msrb.mxu0 %v121_v27  ;;  %607 = vmatpush.msrb.mxu1 %v138_v28  ;;  %v161_v2 = vld [vmem:[%s1921_s2 + $0x3a0] sm:$0xff]  ;;  %v128_v4 = vld [vmem:[%s1921_s2 + $0x298] sm:$0xff]  ;;  %v143_v5 = vld [vmem:[%s1921_s2 + $0x310] sm:$0xff] }
  0x71   :  { %628 = vmatpush.msrb.mxu2 %v153_v29  ;;  %647 = vmatpush.msrb.mxu3 %v170_v30  ;;  %v160_v6 = vld [vmem:[%s1921_s2 + $0x398] sm:$0xff]  ;;  %v110_v7 = vld [vmem:[%s1921_s2 + $0x208] sm:$0xff]  ;;  %v127_v8 = vld [vmem:[%s1921_s2 + $0x290] sm:$0xff] }
  0x72   :  { %589 = vmatpush.msrb.mxu0 %v120_v31  ;;  %608 = vmatpush.msrb.mxu1 %v137_v32  ;;  %v142_v9 = vld [vmem:[%s1921_s2 + $0x308] sm:$0xff]  ;;  %v159_v10 = vld [vmem:[%s1921_s2 + $0x390] sm:$0xff]  ;;  %v109_v11 = vld [vmem:[%s1921_s2 + $0x200] sm:$0xff] }
  0x73   :  { %629 = vmatpush.msrb.mxu2 %v152_v33  ;;  %648 = vmatpush.msrb.mxu3 %v169_v34  ;;  %v126_v12 = vld [vmem:[%s1921_s2 + $0x288] sm:$0xff]  ;;  %v141_v13 = vld [vmem:[%s1921_s2 + $0x300] sm:$0xff]  ;;  %v495_v16 = vld.sshfl [vmem:[#allocation1 + $0x30] sm:$0xff pattern:$0x73625140] }
  0x74   :  { %590 = vmatpush.msrb.mxu0 %v119_v35  ;;  %609 = vmatpush.msrb.mxu1 %v136_v36  ;;  %v158_v14 = vld [vmem:[%s1921_s2 + $0x388] sm:$0xff]  ;;  %v493_v15 = vld.sshfl [vmem:[#allocation1 + $0x20] sm:$0xff pattern:$0x73625140]  ;;  %v701_v28 = vld [vmem:[%s1924_s5 + $0xf0] sm:$0xff] }
  0x75   :  { %630 = vmatpush.msrb.mxu2 %v151_v37  ;;  %649 = vmatpush.msrb.mxu3 %v168_v38  ;;  %v125_v17 = vld [vmem:[%s1921_s2 + $0x280] sm:$0xff]  ;;  %v494_v19 = vld.sshfl [vmem:[#allocation1 + $0x28] sm:$0xff pattern:$0x73625140]  ;;  %v702_v30 = vld [vmem:[%s1924_s5 + $0xf8] sm:$0xff] }
  0x76   :  { %591 = vmatpush.msrb.mxu0 %v118_v39  ;;  %610 = vmatpush.msrb.mxu1 %v135_v40  ;;  %v157_v18 = vld [vmem:[%s1921_s2 + $0x380] sm:$0xff]  ;;  %v496_v20 = vld.sshfl [vmem:[#allocation1 + $0x38] sm:$0xff pattern:$0x73625140]  ;;  %v700_v27 = vld [vmem:[%s1924_s5 + $0xe8] sm:$0xff] }
  0x77   :  { %631 = vmatpush.msrb.mxu2 %v150_v41  ;;  %650 = vmatpush.msrb.mxu3 %v167_v42  ;;  %v699_v26 = vld [vmem:[%s1924_s5 + $0xe0] sm:$0xff]  ;;  %v696_v32 = vld [vmem:[%s1924_s5 + $0xc8] sm:$0xff]  ;;  %v697_v33 = vld [vmem:[%s1924_s5 + $0xd0] sm:$0xff] }
  0x78   :  { %592 = vmatpush.msrb.mxu0 %v117_v43  ;;  %611 = vmatpush.msrb.mxu1 %v134_v44  ;;  %v695_v31 = vld [vmem:[%s1924_s5 + $0xc0] sm:$0xff]  ;;  %v698_v34 = vld [vmem:[%s1924_s5 + $0xd8] sm:$0xff]  ;;  %v692_v37 = vld [vmem:[%s1924_s5 + $0xa8] sm:$0xff] }
  0x79   :  { %632 = vmatpush.msrb.mxu2 %v149_v45  ;;  %651 = vmatpush.msrb.mxu3 %v166_v46  ;;  %v691_v36 = vld [vmem:[%s1924_s5 + $0xa0] sm:$0xff]  ;;  %v693_v38 = vld [vmem:[%s1924_s5 + $0xb0] sm:$0xff]  ;;  %v694_v40 = vld [vmem:[%s1924_s5 + $0xb8] sm:$0xff] }
  0x7a   :  { %593 = vmatpush.msrb.mxu0 %v116_v47  ;;  %612 = vmatpush.msrb.mxu1 %v133_v48  ;;  %v687_v41 = vld [vmem:[%s1924_s5 + $0x80] sm:$0xff]  ;;  %v688_v42 = vld [vmem:[%s1924_s5 + $0x88] sm:$0xff]  ;;  %v689_v43 = vld [vmem:[%s1924_s5 + $0x90] sm:$0xff] }
  0x7b   :  { %633 = vmatpush.msrb.mxu2 %v148_v49  ;;  %652 = vmatpush.msrb.mxu3 %v165_v50  ;;  %v690_v44 = vld [vmem:[%s1924_s5 + $0x98] sm:$0xff]  ;;  %v683_v46 = vld [vmem:[%s1924_s5 + $0x60] sm:$0xff]  ;;  %v684_v47 = vld [vmem:[%s1924_s5 + $0x68] sm:$0xff] }
  0x7c   :  { %594 = vmatpush.msrb.mxu0 %v115_v51  ;;  %613 = vmatpush.msrb.mxu1 %v132_v52  ;;  %v685_v48 = vld [vmem:[%s1924_s5 + $0x70] sm:$0xff]  ;;  %v686_v50 = vld [vmem:[%s1924_s5 + $0x78] sm:$0xff]  ;;  %v679_v51 = vld [vmem:[%s1924_s5 + $0x40] sm:$0xff] }
  0x7d   :  { %634 = vmatpush.msrb.mxu2 %v147_v53  ;;  %653 = vmatpush.msrb.mxu3 %v164_v54  ;;  %v680_v52 = vld [vmem:[%s1924_s5 + $0x48] sm:$0xff]  ;;  %v681_v53 = vld [vmem:[%s1924_s5 + $0x50] sm:$0xff]  ;;  %v682_v54 = vld [vmem:[%s1924_s5 + $0x58] sm:$0xff] }
  0x7e   :  { %595 = vmatpush.msrb.mxu0 %v114_v55  ;;  %614 = vmatpush.msrb.mxu1 %v131_v56  ;;  %v675_v56 = vld [vmem:[%s1924_s5 + $0x20] sm:$0xff] }
  0x7f   :  { %635 = vmatpush.msrb.mxu2 %v146_v57  ;;  %654 = vmatpush.msrb.mxu3 %v163_v58  ;;  %v676_v57 = vld [vmem:[%s1924_s5 + $0x28] sm:$0xff]  ;;  %v677_v58 = vld [vmem:[%s1924_s5 + $0x30] sm:$0xff] }
  0x80   :  { %596 = vmatpush.msrb.mxu0 %v113_v59  ;;  %615 = vmatpush.msrb.mxu1 %v130_v60  ;;  %v678_v60 = vld [vmem:[%s1924_s5 + $0x38] sm:$0xff] }
  0x81   :  { %636 = vmatpush.msrb.mxu2 %v145_v61  ;;  %655 = vmatpush.msrb.mxu3 %v162_v62  ;;  %v671_v61 = vld [vmem:[%s1924_s5] sm:$0xff]  ;;  %v672_v62 = vld [vmem:[%s1924_s5 + $0x8] sm:$0xff] }
  0x82   :  { %597 = vmatpush.msrb.mxu0 %v112_v63  ;;  %616 = vmatpush.msrb.mxu1 %v129_v0  ;;  %v673_v63 = vld [vmem:[%s1924_s5 + $0x10] sm:$0xff]  ;;  %v674_v0 = vld [vmem:[%s1924_s5 + $0x18] sm:$0xff] }
  0x83   :  { %637 = vmatpush.msrb.mxu2 %v144_v1  ;;  %656 = vmatpush.msrb.mxu3 %v161_v2 }
  0x84   :  { %598 = vmatpush.msrb.mxu0 %v111_v3  ;;  %617 = vmatpush.msrb.mxu1 %v128_v4 }
  0x85   :  { %638 = vmatpush.msrb.mxu2 %v143_v5  ;;  %657 = vmatpush.msrb.mxu3 %v160_v6 }
  0x86   :  { %599 = vmatpush.msrb.mxu0 %v110_v7  ;;  %618 = vmatpush.msrb.mxu1 %v127_v8 }
  0x87   :  { %639 = vmatpush.msrb.mxu2 %v142_v9  ;;  %658 = vmatpush.msrb.mxu3 %v159_v10 }
  0x88   :  { %600 = vmatpush.msrb.mxu0 %v109_v11  ;;  %619 = vmatpush.msrb.mxu1 %v126_v12 }
  0x89   :  { %640 = vmatpush.msrb.mxu2 %v141_v13  ;;  %659 = vmatpush.msrb.mxu3 %v158_v14 }
  0x8a   :  { %601 = vmatmul.f32.vlgmr.msrb.gmra.mxu0 %v493_v15  ;;  %641 = vmatmul.f32.vlgmr.msrb.gmra.mxu2 %v495_v16 }
  0x8b   :  { %620 = vmatpush.msrb.mxu1 %v125_v17  ;;  %660 = vmatpush.msrb.mxu3 %v157_v18  ;;  %v899_v18 = vld [vmem:[%s1923_s4] ss:$0 sm:$0xff] }
  0x8c   :  { %621 = vmatmul.f32.vlgmr.msrb.gmra.mxu1 %v494_v19  ;;  %661 = vmatmul.f32.vlgmr.msrb.gmra.mxu3 %v496_v20 }
  0x8d   :  { %725 = vmatpush.msra.mxu0 %v699_v26  ;;  %745 = vmatpush.msra.mxu1 %v700_v27  ;;  %v801_v26 = vld [vmem:[%s1926_s7] sm:$0xf]  ;;  %s927_s7 = smov [#allocation3]  }
  0x8e   :  { %765 = vmatpush.msra.mxu2 %v701_v28  ;;  %785 = vmatpush.msra.mxu3 %v702_v30  ;;  %v815_v28 = vld [vmem:[%s1927_s8] sm:$0xf]  ;;  %s881_s8 = sshll.u32 %s927_s7, 4  ;;  %s882_s8 = int_to_ptr.vmem [resolvable:$true] %s881_s8 }
  0x8f   :  { %726 = vmatpush.msra.mxu0 %v695_v31  ;;  %746 = vmatpush.msra.mxu1 %v696_v32  ;;  %v803_v31 = vperm.slane %v801_v26, 0 }
  0x90   :  { %766 = vmatpush.msra.mxu2 %v697_v33  ;;  %786 = vmatpush.msra.mxu3 %v698_v34  ;;  %v804_v33 = vperm.slane %v801_v26, 1 }
  0x91   :  { %727 = vmatpush.msra.mxu0 %v691_v36  ;;  %747 = vmatpush.msra.mxu1 %v692_v37  ;;  %v818_v37 = vperm.slane %v815_v28, 1 }
  0x92   :  { %767 = vmatpush.msra.mxu2 %v693_v38  ;;  %787 = vmatpush.msra.mxu3 %v694_v40  ;;  %v844_v38 = vld [vmem:[%s1928_s9] sm:$0xf] }
  0x93   :  { %728 = vmatpush.msra.mxu0 %v687_v41  ;;  %748 = vmatpush.msra.mxu1 %v688_v42 }
  0x94   :  { %768 = vmatpush.msra.mxu2 %v689_v43  ;;  %788 = vmatpush.msra.mxu3 %v690_v44  ;;  %v846_v43 = vperm.slane %v844_v38, 0  ;;  %v847_v44 = vperm.slane %v844_v38, 1 }
  0x95   :  { %729 = vmatpush.msra.mxu0 %v683_v46  ;;  %749 = vmatpush.msra.mxu1 %v684_v47 }
  0x96   :  { %769 = vmatpush.msra.mxu2 %v685_v48  ;;  %789 = vmatpush.msra.mxu3 %v686_v50  ;;  %v805_v50 = vperm.slane %v801_v26, 2 }
  0x97   :  { %730 = vmatpush.msra.mxu0 %v679_v51  ;;  %750 = vmatpush.msra.mxu1 %v680_v52  ;;  %v806_v52 = vperm.slane %v801_v26, 3 }
  0x98   :  { %770 = vmatpush.msra.mxu2 %v681_v53  ;;  %790 = vmatpush.msra.mxu3 %v682_v54  ;;  %v819_v53 = vperm.slane %v815_v28, 2  ;;  %v820_v54 = vperm.slane %v815_v28, 3 }
  0x99   :  { %731 = vmatpush.msra.mxu0 %v675_v56  ;;  %751 = vmatpush.msra.mxu1 %v676_v57 }
  0x9a   :  { %771 = vmatpush.msra.mxu2 %v677_v58  ;;  %791 = vmatpush.msra.mxu3 %v678_v60 }
  0x9b   :  { %732 = vmatpush.msra.mxu0 %v671_v61  ;;  %752 = vmatpush.msra.mxu1 %v672_v62  ;;  %v848_v61 = vperm.slane %v844_v38, 2  ;;  %v849_v62 = vperm.slane %v844_v38, 3 }
  0x9c   :  { %772 = vmatpush.msra.mxu2 %v673_v63  ;;  %792 = vmatpush.msra.mxu3 %v674_v0 }
  0xc1   :  { %v341_v22 = vpop.f32.mrf.mxu0 }
  0xc4   :  { %v361_v21 = vpop.f32.mrf.mxu1 }
  0xc5   :  { %v362_v23 = vadd.f32 %v361_v21, %v341_v22  ;;  %v381_v24 = vpop.f32.mrf.mxu2 }
  0xc7   :  { %v382_v25 = vadd.f32 %v381_v24, %v362_v23  ;;  %v703_v23 = vld [vmem:[%s1925_s6] sm:$0xf] }
  0xc8   :  { %v401_v29 = vpop.f32.mrf.mxu3  ;;  %v705_v24 = vperm.slane %v703_v23, 0  ;;  %v708_v40 = vperm.slane %v703_v23, 3 }
  0xc9   :  { %v402_v35 = vadd.f32 %v401_v29, %v382_v25  ;;  %v706_v25 = vperm.slane %v703_v23, 1 }
  0xcb   :  { %v421_v39 = vpop.f32.mrf.mxu0 }
  0xcc   :  { %v422_v45 = vadd.f32 %v421_v39, %v402_v35  ;;  %v817_v35 = vperm.slane %v815_v28, 0  ;;  %v707_v39 = vperm.slane %v703_v23, 2 }
  0xce   :  { %v441_v49 = vpop.f32.mrf.mxu1 }
  0xcf   :  { %v442_v55 = vadd.f32 %v441_v49, %v422_v45  ;;  %v461_v59 = vpop.f32.mrf.mxu2 }
  0xd1   :  { %v462_v1 = vadd.f32 %v461_v59, %v442_v55 }
  0xd2   :  { %v481_v2 = vpop.f32.mrf.mxu3 }
  0xd3   :  { %v482_v4 = vadd.f32 %v481_v2, %v462_v1 }
  0xe5   :  { %v522_v3 = vpop.f32.mrf.mxu0 }
  0xe6   :  { %v523_v5 = vadd.f32 %v522_v3, %v482_v4 }
  0xe8   :  { %v542_v6 = vpop.f32.mrf.mxu1 }
  0xe9   :  { %v543_v8 = vadd.f32 %v542_v6, %v523_v5 }
  0xeb   :  { %v562_v7 = vpop.f32.mrf.mxu2 }
  0xec   :  { %v563_v9 = vadd.f32 %v562_v7, %v543_v8 }
  0xee   :  { %v582_v10 = vpop.f32.mrf.mxu3 }
  0xef   :  { %v583_v11 = vadd.f32 %v582_v10, %v563_v9 }
 0x107   :  { %v602_v12 = vpop.f32.mrf.mxu0 }
 0x108   :  { %v603_v13 = vadd.f32 %v602_v12, %v583_v11 }
 0x109   :  { %v622_v14 = vpop.f32.mrf.mxu1 }
 0x10a   :  { %v623_v15 = vadd.f32 %v622_v14, %v603_v13 }
 0x10d   :  { %v642_v16 = vpop.f32.mrf.mxu2 }
 0x10e   :  { %v643_v17 = vadd.f32 %v642_v16, %v623_v15  ;;  %v900_v16 = vld [vmem:[#allocation2] ss:$0 sm:$0xff] }
 0x10f   :  { %v662_v19 = vpop.f32.mrf.mxu3 }
 0x110   :  { %v663_v20 = vadd.f32 %v662_v19, %v643_v17 }
 0x112   :  { %v669_v21 = vadd.f32 %v899_v18, %v663_v20 }
 0x114   :  { %v670_v22 = vmax.f32 %v669_v21, 0.0 }
 0x116   :  { %894 = vmatmul.msk.f32.vlgmr.msra.gmra.mxu0 %vm713_vm0, %v670_v22  ;;  %895 = vmatmul.msk.f32.vlgmr.msra.gmra.mxu1 %vm713_vm0, %v670_v22 }
 0x117   :  { %896 = vmatmul.msk.f32.vlgmr.msra.gmra.mxu2 %vm713_vm0, %v670_v22  ;;  %897 = vmatmul.msk.f32.vlgmr.msra.gmra.mxu3 %vm713_vm0, %v670_v22 }
 0x193   :  { %v734_v27 = vpop.f32.mrf.mxu0  ;;  %v754_v29 = vpop.f32.mrf.mxu1 }
 0x194   :  { %v735_v30 = vadd.f32 %v734_v27, %v705_v24  ;;  %v755_v32 = vadd.f32 %v754_v29, %v706_v25 }
 0x196   :  { %v797_v34 = vmax.f32 %v735_v30, 0.0  ;;  %v798_v36 = vmax.f32 %v755_v32, 0.0 }
 0x198   :  { %v811_v41 = vmul.f32 %v803_v31, %v797_v34  ;;  %v812_v42 = vmul.f32 %v804_v33, %v798_v36 }
 0x19a   :  { %v825_v45 = vadd.f32 %v817_v35, %v811_v41  ;;  %v826_v46 = vadd.f32 %v818_v37, %v812_v42  ;;  %v774_v47 = vpop.f32.mrf.mxu2  ;;  %v794_v48 = vpop.f32.mrf.mxu3 }
 0x19b   :  { %v775_v49 = vadd.f32 %v774_v47, %v707_v39  ;;  %v795_v51 = vadd.f32 %v794_v48, %v708_v40 }
 0x19c   :  { %v854_v57 = vmul.f32 %v846_v43, %v825_v45  ;;  %v855_v58 = vmul.f32 %v847_v44, %v826_v46  ;;  %v833_v63 = vrot.slane %v826_v46, 6 }
 0x19d   :  { %v799_v55 = vmax.f32 %v775_v49, 0.0  ;;  %v800_v56 = vmax.f32 %v795_v51, 0.0 }
 0x19e   :  { %v858_v2 = vsel %vm836_vm1, %v854_v57, 0.0  ;;  %v859_v3 = vsel %vm836_vm1, %v855_v58, 0.0  ;;  %v837_v10 = vsel %vm836_vm1, %v825_v45, %v833_v63 }
 0x19f   :  { %v813_v59 = vmul.f32 %v805_v50, %v799_v55  ;;  %v814_v60 = vmul.f32 %v806_v52, %v800_v56  ;;  %v860_v8 = vadd.f32 %v859_v3, %v858_v2 }
 0x1a1   :  { %v827_v0 = vadd.f32 %v819_v53, %v813_v59  ;;  %v828_v1 = vadd.f32 %v820_v54, %v814_v60 }
 0x1a3   :  { %v834_v4 = vrot.slane %v827_v0, 4  ;;  %v835_v5 = vrot.slane %v828_v1, 2  ;;  %v856_v6 = vmul.f32 %v848_v61, %v827_v0  ;;  %v857_v7 = vmul.f32 %v849_v62, %v828_v1 }
 0x1a5   :  { %v861_v9 = vsel %vm836_vm1, %v856_v6, 0.0  ;;  %v839_v11 = vsel %vm838_vm2, %v834_v4, %v835_v5  ;;  %v863_v14 = vsel %vm836_vm1, %v857_v7, 0.0 }
 0x1a6   :  { %v862_v12 = vadd.f32 %v861_v9, %v860_v8  ;;  %v841_v13 = vsel %vm840_vm3, %v837_v10, %v839_v11 }
 0x1a7   :  { %843 = vst [vmem:[#allocation3] sm:$0xff] %v841_v13 }
 0x1a8   :  { %v864_v15 = vadd.f32 %v863_v14, %v862_v12  ;;  %886 = dma.vmem_to_hbm [thread:$0]  %s882_s8, 128, %s884_s30, [#allocation4]  }
 0x1aa   :  { %865 = vadd.xlane.f32.xlu0 %v864_v15 }
 0x21d   :  { %v866_v17 = vpop.xlane.xlu0 %865 }
 0x21e   :  { %v871_v18 = vadd.f32 %v900_v16, %v866_v17 }
 0x220   :  { %873 = vst.msk [vmem:[%s1930_s11] sm:$0x3] %vm872_vm4, %v871_v18 }
 0x221   :  { %925 = dma.done.wait [#allocation4], 128  }
 0x222   :  { %926 = vsyncadd [#allocation4], 4294967168 }
 0x223   :  { %893 = vsyncpa [#allocation4], 1 }

</bundles_post_ra>
